<compile_context>
chip_gen: v5e
topology: v5e:2x2
jax: 0.10.0
libtpu: 0.0.40
codegen_flags: <defaults>
</compile_context>

<pallas_src>
import functools

import jax
import jax.numpy as jnp
from jax import lax
from jax.experimental import pallas as pl
from jax.experimental.pallas import tpu as pltpu


_APPROX_GELU = True  # tanh-approx GELU (EUP tanh). False -> exact erf (torch parity).


def _gelu(x):
    if _APPROX_GELU:
        c = jnp.float32(0.7978845608028654)  # sqrt(2/pi)
        return 0.5 * x * (1.0 + jnp.tanh(c * (x + 0.044715 * x * x * x)))
    return 0.5 * x * (1.0 + lax.erf(x * jnp.float32(0.7071067811865476)))


def _round_up(x, m):
    return (x + m - 1) // m * m


def _cdiv(a, b):
    return (a + b - 1) // b


def _vmem_cap_bytes():
    """~85% of this generation's physical VMEM; conservative 64 MiB fallback (v7x)."""
    try:
        return int(0.85 * pltpu.get_tpu_info().vmem_capacity_bytes)
    except Exception:
        return int(0.85 * (64 << 20))


def _vmem_need(tm, tn, in_p, mid_p, x_bytes, out_bytes, slab, resident_w2,
               single_buffer_invariants=True):
    """Real VMEM requirement (bytes), incl. the f32 matmul temporaries."""
    inv_bufs = 1 if single_buffer_invariants else 2
    w2_bufs = inv_bufs if resident_w2 else 2
    need = (2 * tm * in_p * x_bytes          # x tile (caller dtype), double-buffered
            + tm * in_p * 2                  # in-kernel bf16 copy of the x tile
            + inv_bufs * in_p * mid_p * 2    # w1 (bf16), grid-invariant
            + inv_bufs * mid_p * 4           # b1 (f32)
            + w2_bufs * mid_p * tn * 2       # w2 tile(s) (bf16)
            + w2_bufs * tn * 4               # b2 tile(s) (f32)
            + tm * mid_p * 2                 # h scratch (bf16)
            + tm * slab * 4                  # f32 first-matmul / GELU slab temporary
            + tm * tn * 4                    # f32 second-matmul temporary
            + 2 * tm * tn * out_bytes)       # out tile, double-buffered
    return need + (2 << 20)                  # Mosaic internal-scratch headroom


def _choose_tiles(n, in_p, mid_p, out_p, x_bytes, out_bytes, slab, cap, tile_rows):
    tm_pref = min(_round_up(tile_rows, 128), _round_up(n, 128))
    if n >= 256:
        # Guarantee >= 2 row tiles so the "parallel" row axis spans both v7x TCs.
        tm_pref = min(tm_pref, _round_up(_cdiv(n, 2), 128))
    tm_pref = max(tm_pref, 128)
    cands, seen = [], set()
    for t in (tm_pref, 1024, 768, 512, 384, 256, 128):
        if 128 <= t <= tm_pref and t not in seen:
            cands.append(t)
            seen.add(t)
    # 1) Prefer fully VMEM-resident w2: no per-row-tile re-streaming (HBM-bound
    #    at tm~512 on v6e/v7x).
    for tm in cands:
        if _vmem_need(tm, out_p, in_p, mid_p, x_bytes, out_bytes, slab, True) <= cap:
            return tm, out_p
    # 2) Stream w2 column tiles; keep >= 256 lanes where possible (2x256^2 MXU cadence).
    for tm in cands:
        for tn in (512, 256, 128):
            if tn <= out_p and out_p % tn == 0 and \
               _vmem_need(tm, tn, in_p, mid_p, x_bytes, out_bytes, slab, False) <= cap:
                return tm, tn
    # TODO(synk): if even tm=128/tn=128 doesn't fit, w1 itself needs K-streaming
    # (pltpu.emit_pipeline over (tk, mid_p) slabs); not needed at these sizes.
    return 128, min(out_p, 128)


def _make_kernel(n_slabs, slab):
    def mlp_kernel(x_ref, w1_ref, b1_ref, w2_ref, b2_ref, o_ref, h_ref):
        # Grid = (row tiles [parallel], output-column tiles [arbitrary]).
        # The hidden activation for this row tile is computed once (j == 0), chunked
        # over `mid` to bound the f32 temporary, cached in bf16 VMEM scratch and
        # reused for every output-column tile.
        j = pl.program_id(1)

        @pl.when(j == 0)
        def _():
            x_bf = x_ref[...].astype(jnp.bfloat16)   # in-kernel cast for the MXU

            if n_slabs == 1:
                h = jnp.dot(x_bf, w1_ref[...], preferred_element_type=jnp.float32)
                h = h + b1_ref[...]
                h_ref[...] = _gelu(h).astype(h_ref.dtype)
            else:
                def slab_body(ci, carry):
                    c = pl.multiple_of(ci * slab, 128)
                    h = jnp.dot(x_bf, w1_ref[:, pl.ds(c, slab)],
                                preferred_element_type=jnp.float32)
                    h = h + b1_ref[:, pl.ds(c, slab)]
                    h_ref[:, pl.ds(c, slab)] = _gelu(h).astype(h_ref.dtype)
                    return carry

                lax.fori_loop(0, n_slabs, slab_body, 0, unroll=(n_slabs <= 8))

        y = jnp.dot(h_ref[...], w2_ref[...], preferred_element_type=jnp.float32)
        y = y + b2_ref[...]
        o_ref[...] = y.astype(o_ref.dtype)

    return mlp_kernel


def prepare_params(params):
    """Pad feature dims to 128-multiples and cast weights to bf16 ONCE (off the hot path)."""
    w1, b1, w2, b2 = params
    in_size, mid = w1.shape
    out = w2.shape[1]
    in_p = _round_up(in_size, 128)
    mid_p = _round_up(mid, 128)
    out_p = _round_up(out, 128)
    w1p = jnp.pad(w1, ((0, in_p - in_size), (0, mid_p - mid))).astype(jnp.bfloat16)
    w2p = jnp.pad(w2, ((0, mid_p - mid), (0, out_p - out))).astype(jnp.bfloat16)
    b1p = jnp.pad(jnp.reshape(b1, (1, -1)), ((0, 0), (0, mid_p - mid))).astype(jnp.float32)
    b2p = jnp.pad(jnp.reshape(b2, (1, -1)), ((0, 0), (0, out_p - out))).astype(jnp.float32)
    meta = {"in_size": in_size, "mid_size": mid, "out_size": out}
    return (w1p, b1p, w2p, b2p, meta)


def mlp_pallas(x2d, prepared, *, tile_rows=512):
    """x2d: (N, in_size). prepared = prepare_params((w1, b1, w2, b2))."""
    w1p, b1p, w2p, b2p, meta = prepared
    n, in_size = x2d.shape
    assert in_size == meta["in_size"]
    out = meta["out_size"]
    in_p, mid_p = w1p.shape
    out_p = w2p.shape[1]
    orig_dtype = x2d.dtype
    x_bytes = jnp.dtype(orig_dtype).itemsize
    out_bytes = x_bytes

    # Only the K (in) dim of x needs zero padding (skipped when already 128-aligned).
    # No row padding: cdiv grid + partial last row block (garbage rows never written).
    if in_p != in_size:
        x2d = jnp.pad(x2d, ((0, 0), (0, in_p - in_size)))

    slab = 512 if mid_p % 512 == 0 else (256 if mid_p % 256 == 0 else 128)
    slab = min(slab, mid_p)
    n_slabs = mid_p // slab

    cap = _vmem_cap_bytes()
    tm, tn = _choose_tiles(n, in_p, mid_p, out_p, x_bytes, out_bytes, slab, cap, tile_rows)
    n_row = _cdiv(n, tm)
    n_col = out_p // tn
    resident_w2 = (n_col == 1)

    # Request enough scoped VMEM for the worst case (double-buffered fallback),
    # clamped to this generation's physical capacity.
    need_worst = _vmem_need(tm, tn, in_p, mid_p, x_bytes, out_bytes, slab,
                            resident_w2, single_buffer_invariants=False)
    vmem_limit = int(min(cap, max(need_worst, 32 << 20)))

    w2_sweeps = 1 if resident_w2 else n_row
    cost = pl.CostEstimate(
        flops=2 * n * (in_p * mid_p + mid_p * out_p),
        transcendentals=n * mid_p,
        bytes_accessed=(n * in_p * x_bytes + in_p * mid_p * 2 + mid_p * 4
                        + w2_sweeps * (mid_p * out_p * 2 + out_p * 4)
                        + n * out_p * out_bytes),
    )
    kernel = _make_kernel(n_slabs, slab)

    def run(single_buffer_invariants):
        inv = {"pipeline_mode": pl.Buffered(1)} if single_buffer_invariants else {}
        w2_kw = inv if resident_w2 else {}
        return pl.pallas_call(
            kernel,
            out_shape=jax.ShapeDtypeStruct((n, out_p), orig_dtype),
            grid_spec=pltpu.PrefetchScalarGridSpec(
                num_scalar_prefetch=0,
                grid=(n_row, n_col),
                in_specs=[
                    pl.BlockSpec((tm, in_p), lambda i, j: (i, 0)),
                    pl.BlockSpec((in_p, mid_p), lambda i, j: (0, 0), **inv),
                    pl.BlockSpec((1, mid_p), lambda i, j: (0, 0), **inv),
                    pl.BlockSpec((mid_p, tn), lambda i, j: (0, j), **w2_kw),
                    pl.BlockSpec((1, tn), lambda i, j: (0, j), **w2_kw),
                ],
                out_specs=pl.BlockSpec((tm, tn), lambda i, j: (i, j)),
                scratch_shapes=[pltpu.VMEM((tm, mid_p), jnp.bfloat16)],
            ),
            compiler_params=pltpu.CompilerParams(
                # Column axis MUST stay "arbitrary": h scratch is written only at
                # j == 0 and would be uninitialized on a second core.
                dimension_semantics=("parallel", "arbitrary"),
                vmem_limit_bytes=vmem_limit),
            cost_estimate=cost,
        )(x2d, w1p, b1p, w2p, b2p)

    try:
        # Preferred: grid-invariant weights single-buffered (halves resident weight VMEM).
        y = run(single_buffer_invariants=True)
    except Exception:
        # Conservative fallback if this Pallas version rejects Buffered(1).
        y = run(single_buffer_invariants=False)

    return y if out_p == out else y[:, :out]


def mlp_forward(x, prepared, *, tile_rows=512):
    """x: (..., in_size) -> (..., out_size), matching the PyTorch MLP forward."""
    # TODO(synk): dropout is skipped (MLP default dropout_r=0.0); nonzero p would need
    # pltpu.prng_seed / pltpu.prng_random_bits in-kernel.
    lead = x.shape[:-1]
    x2d = x.reshape(-1, x.shape[-1])
    y2d = mlp_pallas(x2d, prepared, tile_rows=tile_rows)
    return y2d.reshape(*lead, y2d.shape[-1])


def init_params(key, in_size, mid_size, out_size, dtype=jnp.float32):
    # Deterministic init mimicking nn.Linear default (uniform +/- 1/sqrt(fan_in));
    # weights stored as (in, out), i.e. pre-transposed vs. torch's (out, in).
    k1, k2, k3, k4 = jax.random.split(key, 4)
    lim1 = 1.0 / jnp.sqrt(in_size)
    lim2 = 1.0 / jnp.sqrt(mid_size)
    w1 = jax.random.uniform(k1, (in_size, mid_size), dtype, -lim1, lim1)
    b1 = jax.random.uniform(k2, (1, mid_size), dtype, -lim1, lim1)
    w2 = jax.random.uniform(k3, (mid_size, out_size), dtype, -lim2, lim2)
    b2 = jax.random.uniform(k4, (1, out_size), dtype, -lim2, lim2)
    return w1, b1, w2, b2


if __name__ == "__main__":
    key = jax.random.PRNGKey(0)
    kx, kp = jax.random.split(key)

    batch, seq = 2, 8
    in_size, mid_size, out_size = 32, 64, 32

    x = jax.random.normal(kx, (batch, seq, in_size), jnp.float32)
    params = init_params(kp, in_size, mid_size, out_size)
    prepared = prepare_params(params)   # pad/cast weights once, outside the hot path

    y = mlp_forward(x, prepared)
    y = jax.block_until_ready(y)

    # Reference in plain f32 JAX with torch semantics (exact-erf GELU). The kernel
    # uses bf16 MXU operands (f32 accumulation) and tanh-approx GELU, so compare
    # with a bf16-appropriate tolerance.
    w1, b1, w2, b2 = params
    h_ref = 0.5 * (x @ w1 + b1[0]) * (1.0 + lax.erf((x @ w1 + b1[0]) * (1.0 / jnp.sqrt(2.0))))
    y_ref = h_ref @ w2 + b2[0]

    assert y.shape == (batch, seq, out_size)
    err = float(jnp.max(jnp.abs(y - y_ref)))
    assert jnp.allclose(y, y_ref, atol=5e-2, rtol=5e-2), err

    print("KERNEL_OK")
</pallas_src>

<mosaic_0001>
module attributes {stable_mosaic.version = 11 : i64} {
  func.func @mlp_kernel(%arg0: i32, %arg1: i32, %arg2: memref<128x128xf32, #tpu.memory_space<vmem>>, %arg3: memref<128x128xbf16, #tpu.memory_space<vmem>>, %arg4: memref<1x128xf32, #tpu.memory_space<vmem>>, %arg5: memref<128x128xbf16, #tpu.memory_space<vmem>>, %arg6: memref<1x128xf32, #tpu.memory_space<vmem>>, %arg7: memref<128x128xf32, #tpu.memory_space<vmem>>, %arg8: memref<128x128xbf16, #tpu.memory_space<vmem>>) attributes {dimension_semantics = [#tpu.dimension_semantics<parallel>, #tpu.dimension_semantics<arbitrary>], iteration_bounds = array<i64: 1, 1>, scalar_prefetch = 0 : i64, scratch_operands = 1 : i64, tpu.core_type = #tpu.core_type<tc>, window_params = [{transform_indices = @transform_0, window_bounds = array<i64: 128, 128>}, {pipeline_mode = #tpu.pipeline_mode<synchronous>, transform_indices = @transform_1, window_bounds = array<i64: 128, 128>}, {pipeline_mode = #tpu.pipeline_mode<synchronous>, transform_indices = @transform_2, window_bounds = array<i64: 1, 128>}, {pipeline_mode = #tpu.pipeline_mode<synchronous>, transform_indices = @transform_3, window_bounds = array<i64: 128, 128>}, {pipeline_mode = #tpu.pipeline_mode<synchronous>, transform_indices = @transform_4, window_bounds = array<i64: 1, 128>}, {transform_indices = @transform_5, window_bounds = array<i64: 128, 128>}]} {
    %c0_i32 = arith.constant 0 : i32
    %0 = arith.cmpi eq, %arg1, %c0_i32 : i32
    %1 = arith.extui %0 : i1 to i32
    %c0_i32_0 = arith.constant 0 : i32
    %2 = arith.cmpi ne, %1, %c0_i32_0 : i32
    scf.if %2 {
      %c0_8 = arith.constant 0 : index
      %c0_9 = arith.constant 0 : index
      %10 = vector.load %arg2[%c0_8, %c0_9] : memref<128x128xf32, #tpu.memory_space<vmem>>, vector<128x128xf32>
      %11 = arith.truncf %10 : vector<128x128xf32> to vector<128x128xbf16>
      %c0_10 = arith.constant 0 : index
      %c0_11 = arith.constant 0 : index
      %12 = vector.load %arg3[%c0_10, %c0_11] : memref<128x128xbf16, #tpu.memory_space<vmem>>, vector<128x128xbf16>
      %cst_12 = arith.constant dense<0.000000e+00> : vector<128x128xf32>
      %13 = tpu.matmul %11, %12, %cst_12 {dimension_numbers = #tpu.dot_dimension_numbers<[1], [0], [0], [1], [0, 0, 1, 1], [], []>} : vector<128x128xbf16>, vector<128x128xbf16>, vector<128x128xf32> -> vector<128x128xf32>
      %c0_13 = arith.constant 0 : index
      %c0_14 = arith.constant 0 : index
      %14 = vector.load %arg4[%c0_13, %c0_14] : memref<1x128xf32, #tpu.memory_space<vmem>>, vector<1x128xf32>
      %15 = vector.broadcast %14 : vector<1x128xf32> to vector<128x128xf32>
      %16 = arith.addf %13, %15 : vector<128x128xf32>
      %cst_15 = arith.constant 5.000000e-01 : f32
      %17 = vector.broadcast %cst_15 : f32 to vector<128x128xf32>
      %18 = arith.mulf %17, %16 : vector<128x128xf32>
      %cst_16 = arith.constant 4.471500e-02 : f32
      %19 = vector.broadcast %cst_16 : f32 to vector<128x128xf32>
      %20 = arith.mulf %19, %16 : vector<128x128xf32>
      %21 = arith.mulf %20, %16 : vector<128x128xf32>
      %22 = arith.mulf %21, %16 : vector<128x128xf32>
      %23 = arith.addf %16, %22 : vector<128x128xf32>
      %cst_17 = arith.constant 0.797884583 : f32
      %24 = vector.broadcast %cst_17 : f32 to vector<128x128xf32>
      %25 = arith.mulf %24, %23 : vector<128x128xf32>
      %26 = math.tanh %25 : vector<128x128xf32>
      %cst_18 = arith.constant 1.000000e+00 : f32
      %27 = vector.broadcast %cst_18 : f32 to vector<128x128xf32>
      %28 = arith.addf %27, %26 : vector<128x128xf32>
      %29 = arith.mulf %18, %28 : vector<128x128xf32>
      %30 = arith.truncf %29 : vector<128x128xf32> to vector<128x128xbf16>
      %c0_19 = arith.constant 0 : index
      %c0_20 = arith.constant 0 : index
      %31 = vector.load %arg8[%c0_19, %c0_20] : memref<128x128xbf16, #tpu.memory_space<vmem>>, vector<128x128xbf16>
      tpu.vector_store %arg8[%c0_19, %c0_20], %30 {strides = array<i32>} : memref<128x128xbf16, #tpu.memory_space<vmem>>, vector<128x128xbf16>,
    } else {
    }
    %c0 = arith.constant 0 : index
    %c0_1 = arith.constant 0 : index
    %3 = vector.load %arg8[%c0, %c0_1] : memref<128x128xbf16, #tpu.memory_space<vmem>>, vector<128x128xbf16>
    %c0_2 = arith.constant 0 : index
    %c0_3 = arith.constant 0 : index
    %4 = vector.load %arg5[%c0_2, %c0_3] : memref<128x128xbf16, #tpu.memory_space<vmem>>, vector<128x128xbf16>
    %cst = arith.constant dense<0.000000e+00> : vector<128x128xf32>
    %5 = tpu.matmul %3, %4, %cst {dimension_numbers = #tpu.dot_dimension_numbers<[1], [0], [0], [1], [0, 0, 1, 1], [], []>} : vector<128x128xbf16>, vector<128x128xbf16>, vector<128x128xf32> -> vector<128x128xf32>
    %c0_4 = arith.constant 0 : index
    %c0_5 = arith.constant 0 : index
    %6 = vector.load %arg6[%c0_4, %c0_5] : memref<1x128xf32, #tpu.memory_space<vmem>>, vector<1x128xf32>
    %7 = vector.broadcast %6 : vector<1x128xf32> to vector<128x128xf32>
    %8 = arith.addf %5, %7 : vector<128x128xf32>
    %c0_6 = arith.constant 0 : index
    %c0_7 = arith.constant 0 : index
    %9 = vector.load %arg7[%c0_6, %c0_7] : memref<128x128xf32, #tpu.memory_space<vmem>>, vector<128x128xf32>
    tpu.vector_store %arg7[%c0_6, %c0_7], %8 {strides = array<i32>} : memref<128x128xf32, #tpu.memory_space<vmem>>, vector<128x128xf32>,
    return
  }
  func.func @transform_0(%arg0: i32, %arg1: i32) -> (i32, i32) {
    %c0_i32 = arith.constant 0 : i32
    %c0_i32_0 = arith.constant 0 : i32
    return %arg0, %c0_i32 : i32, i32
  }
  func.func @transform_1(%arg0: i32, %arg1: i32) -> (i32, i32) {
    %c0_i32 = arith.constant 0 : i32
    %c0_i32_0 = arith.constant 0 : i32
    %c0_i32_1 = arith.constant 0 : i32
    return %c0_i32, %c0_i32_0 : i32, i32
  }
  func.func @transform_2(%arg0: i32, %arg1: i32) -> (i32, i32) {
    %c0_i32 = arith.constant 0 : i32
    %c0_i32_0 = arith.constant 0 : i32
    %c0_i32_1 = arith.constant 0 : i32
    return %c0_i32, %c0_i32_0 : i32, i32
  }
  func.func @transform_3(%arg0: i32, %arg1: i32) -> (i32, i32) {
    %c0_i32 = arith.constant 0 : i32
    %c0_i32_0 = arith.constant 0 : i32
    return %c0_i32, %arg1 : i32, i32
  }
  func.func @transform_4(%arg0: i32, %arg1: i32) -> (i32, i32) {
    %c0_i32 = arith.constant 0 : i32
    %c0_i32_0 = arith.constant 0 : i32
    return %c0_i32, %arg1 : i32, i32
  }
  func.func @transform_5(%arg0: i32, %arg1: i32) -> (i32, i32) {
    %c0_i32 = arith.constant 0 : i32
    return %arg0, %arg1 : i32, i32
  }
}

module attributes {stable_mosaic.version = 11 : i64} {
  func.func @mlp_kernel(%arg0: i32, %arg1: i32, %arg2: memref<128x128xf32, #tpu.memory_space<vmem>>, %arg3: memref<128x128xbf16, #tpu.memory_space<vmem>>, %arg4: memref<1x128xf32, #tpu.memory_space<vmem>>, %arg5: memref<128x128xbf16, #tpu.memory_space<vmem>>, %arg6: memref<1x128xf32, #tpu.memory_space<vmem>>, %arg7: memref<128x128xf32, #tpu.memory_space<vmem>>, %arg8: memref<128x128xbf16, #tpu.memory_space<vmem>>) attributes {dimension_semantics = [#tpu.dimension_semantics<parallel>, #tpu.dimension_semantics<arbitrary>], iteration_bounds = array<i64: 1, 1>, scalar_prefetch = 0 : i64, scratch_operands = 1 : i64, tpu.core_type = #tpu.core_type<tc>, window_params = [{transform_indices = @transform_0, window_bounds = array<i64: 128, 128>}, {pipeline_mode = #tpu.pipeline_mode<synchronous>, transform_indices = @transform_1, window_bounds = array<i64: 128, 128>}, {pipeline_mode = #tpu.pipeline_mode<synchronous>, transform_indices = @transform_2, window_bounds = array<i64: 1, 128>}, {transform_indices = @transform_3, window_bounds = array<i64: 128, 128>}, {transform_indices = @transform_4, window_bounds = array<i64: 1, 128>}, {transform_indices = @transform_5, window_bounds = array<i64: 128, 128>}]} {
    %c0_i32 = arith.constant 0 : i32
    %0 = arith.cmpi eq, %arg1, %c0_i32 : i32
    %1 = arith.extui %0 : i1 to i32
    %c0_i32_0 = arith.constant 0 : i32
    %2 = arith.cmpi ne, %1, %c0_i32_0 : i32
    scf.if %2 {
      %c0_8 = arith.constant 0 : index
      %c0_9 = arith.constant 0 : index
      %10 = vector.load %arg2[%c0_8, %c0_9] : memref<128x128xf32, #tpu.memory_space<vmem>>, vector<128x128xf32>
      %11 = arith.truncf %10 : vector<128x128xf32> to vector<128x128xbf16>
      %c0_10 = arith.constant 0 : index
      %c0_11 = arith.constant 0 : index
      %12 = vector.load %arg3[%c0_10, %c0_11] : memref<128x128xbf16, #tpu.memory_space<vmem>>, vector<128x128xbf16>
      %cst_12 = arith.constant dense<0.000000e+00> : vector<128x128xf32>
      %13 = tpu.matmul %11, %12, %cst_12 {dimension_numbers = #tpu.dot_dimension_numbers<[1], [0], [0], [1], [0, 0, 1, 1], [], []>} : vector<128x128xbf16>, vector<128x128xbf16>, vector<128x128xf32> -> vector<128x128xf32>
      %c0_13 = arith.constant 0 : index
      %c0_14 = arith.constant 0 : index
      %14 = vector.load %arg4[%c0_13, %c0_14] : memref<1x128xf32, #tpu.memory_space<vmem>>, vector<1x128xf32>
      %15 = vector.broadcast %14 : vector<1x128xf32> to vector<128x128xf32>
      %16 = arith.addf %13, %15 : vector<128x128xf32>
      %cst_15 = arith.constant 5.000000e-01 : f32
      %17 = vector.broadcast %cst_15 : f32 to vector<128x128xf32>
      %18 = arith.mulf %17, %16 : vector<128x128xf32>
      %cst_16 = arith.constant 4.471500e-02 : f32
      %19 = vector.broadcast %cst_16 : f32 to vector<128x128xf32>
      %20 = arith.mulf %19, %16 : vector<128x128xf32>
      %21 = arith.mulf %20, %16 : vector<128x128xf32>
      %22 = arith.mulf %21, %16 : vector<128x128xf32>
      %23 = arith.addf %16, %22 : vector<128x128xf32>
      %cst_17 = arith.constant 0.797884583 : f32
      %24 = vector.broadcast %cst_17 : f32 to vector<128x128xf32>
      %25 = arith.mulf %24, %23 : vector<128x128xf32>
      %26 = math.tanh %25 : vector<128x128xf32>
      %cst_18 = arith.constant 1.000000e+00 : f32
      %27 = vector.broadcast %cst_18 : f32 to vector<128x128xf32>
      %28 = arith.addf %27, %26 : vector<128x128xf32>
      %29 = arith.mulf %18, %28 : vector<128x128xf32>
      %30 = arith.truncf %29 : vector<128x128xf32> to vector<128x128xbf16>
      %c0_19 = arith.constant 0 : index
      %c0_20 = arith.constant 0 : index
      %31 = vector.load %arg8[%c0_19, %c0_20] : memref<128x128xbf16, #tpu.memory_space<vmem>>, vector<128x128xbf16>
      tpu.vector_store %arg8[%c0_19, %c0_20], %30 {strides = array<i32>} : memref<128x128xbf16, #tpu.memory_space<vmem>>, vector<128x128xbf16>,
    } else {
    }
    %c0 = arith.constant 0 : index
    %c0_1 = arith.constant 0 : index
    %3 = vector.load %arg8[%c0, %c0_1] : memref<128x128xbf16, #tpu.memory_space<vmem>>, vector<128x128xbf16>
    %c0_2 = arith.constant 0 : index
    %c0_3 = arith.constant 0 : index
    %4 = vector.load %arg5[%c0_2, %c0_3] : memref<128x128xbf16, #tpu.memory_space<vmem>>, vector<128x128xbf16>
    %cst = arith.constant dense<0.000000e+00> : vector<128x128xf32>
    %5 = tpu.matmul %3, %4, %cst {dimension_numbers = #tpu.dot_dimension_numbers<[1], [0], [0], [1], [0, 0, 1, 1], [], []>} : vector<128x128xbf16>, vector<128x128xbf16>, vector<128x128xf32> -> vector<128x128xf32>
    %c0_4 = arith.constant 0 : index
    %c0_5 = arith.constant 0 : index
    %6 = vector.load %arg6[%c0_4, %c0_5] : memref<1x128xf32, #tpu.memory_space<vmem>>, vector<1x128xf32>
    %7 = vector.broadcast %6 : vector<1x128xf32> to vector<128x128xf32>
    %8 = arith.addf %5, %7 : vector<128x128xf32>
    %c0_6 = arith.constant 0 : index
    %c0_7 = arith.constant 0 : index
    %9 = vector.load %arg7[%c0_6, %c0_7] : memref<128x128xf32, #tpu.memory_space<vmem>>, vector<128x128xf32>
    tpu.vector_store %arg7[%c0_6, %c0_7], %8 {strides = array<i32>} : memref<128x128xf32, #tpu.memory_space<vmem>>, vector<128x128xf32>,
    return
  }
  func.func @transform_0(%arg0: i32, %arg1: i32) -> (i32, i32) {
    %c0_i32 = arith.constant 0 : i32
    %c0_i32_0 = arith.constant 0 : i32
    return %arg0, %c0_i32 : i32, i32
  }
  func.func @transform_1(%arg0: i32, %arg1: i32) -> (i32, i32) {
    %c0_i32 = arith.constant 0 : i32
    %c0_i32_0 = arith.constant 0 : i32
    %c0_i32_1 = arith.constant 0 : i32
    return %c0_i32, %c0_i32_0 : i32, i32
  }
  func.func @transform_2(%arg0: i32, %arg1: i32) -> (i32, i32) {
    %c0_i32 = arith.constant 0 : i32
    %c0_i32_0 = arith.constant 0 : i32
    %c0_i32_1 = arith.constant 0 : i32
    return %c0_i32, %c0_i32_0 : i32, i32
  }
  func.func @transform_3(%arg0: i32, %arg1: i32) -> (i32, i32) {
    %c0_i32 = arith.constant 0 : i32
    %c0_i32_0 = arith.constant 0 : i32
    return %c0_i32, %arg1 : i32, i32
  }
  func.func @transform_4(%arg0: i32, %arg1: i32) -> (i32, i32) {
    %c0_i32 = arith.constant 0 : i32
    %c0_i32_0 = arith.constant 0 : i32
    return %c0_i32, %arg1 : i32, i32
  }
  func.func @transform_5(%arg0: i32, %arg1: i32) -> (i32, i32) {
    %c0_i32 = arith.constant 0 : i32
    return %arg0, %arg1 : i32, i32
  }
}

</mosaic_0001>

<bundles_post_ra>
// kernel: tpu_custom_call.1
= control target key start
LH: loop header
LB: loop body
LE: loop exit
PB: predicated region body
PF: predicated region fallthrough
CT: control target
= control target key end

     0   :  { %10 = vsyncpa [#allocation4], 0  ;;  %s1083_s0 = inlined_call_operand.hbm [shape: f32[16,128], index: 0, kind: input, shape index: {}]   ;;  %s1084_s1 = inlined_call_operand.hbm [shape: bf16[128,128], index: 1, kind: input, shape index: {}]   ;;  %s1085_s2 = inlined_call_operand.vmem [shape: f32[1,128], index: 2, kind: input, shape index: {}]   ;;  %s1086_s3 = inlined_call_operand.hbm [shape: bf16[128,128], index: 3, kind: input, shape index: {}]   ;;  %s1087_s4 = inlined_call_operand.vmem [shape: f32[1,128], index: 4, kind: input, shape index: {}]   ;;  %s1088_s5 = inlined_call_operand.hbm [shape: f32[16,128], index: 5, kind: output, shape index: {}]  }
   0x1   :  { %11 = vsyncpa [#allocation7], 0 }
   0x2   :  { %12 = vsyncpa [#allocation5], 0  ;;  %s30_s20 = sshll.u32 %s1084_s1, 4  ;;  %s31_s20 = int_to_ptr.hbm [resolvable:$true] %s30_s20 }
   0x3   :  { %16 = vsyncadd [#allocation4], 1792  ;;  %s933_s21 = smov [#allocation6]   ;;  %s17_s25 = sshll.u32 %s1083_s0, 4  ;;  %s18_s25 = int_to_ptr.hbm [resolvable:$true] %s17_s25 }
   0x4   :  { %s32_s22 = sshll.u32 %s933_s21, 4  ;;  %s934_s26 = smov 64   ;;  %s33_s22 = int_to_ptr.vmem [resolvable:$true] %s32_s22 }
   0x5   :  { %s935_s27 = smov 4   ;;  %s936_s28 = smov [#allocation3]  }
   0x6   :  { %38 = dma.hbm_to_vmem [thread:$0]  %s31_s20, 1024, %s33_s22, [#allocation7], %s934_s26, %s934_s26, %s935_s27  }
   0x7   :  { %s19_s29 = sshll.u32 %s936_s28, 4  ;;  %s937_s30 = smov 128   ;;  %s20_s29 = int_to_ptr.vmem [resolvable:$true] %s19_s29 }
   0x8   :  { %s938_s6 = smov 8   ;;  %s45_s8 = sshll.u32 %s1086_s3, 4  ;;  %s46_s8 = int_to_ptr.hbm [resolvable:$true] %s45_s8 }
   0x9   :  { %25 = dma.hbm_to_vmem [thread:$0]  %s18_s25, 256, %s20_s29, [#allocation4], %s937_s30, %s937_s30, %s938_s6  }
   0xa   :  { %s939_s9 = smov [#allocation8]  }
   0xb   :  { %s47_s0 = sshll.u32 %s939_s9, 4  ;;  %s48_s0 = int_to_ptr.vmem [resolvable:$true] %s47_s0 }
   0xc   :  { %53 = dma.hbm_to_vmem [thread:$0]  %s46_s8, 1024, %s48_s0, [#allocation7], %s934_s26, %s934_s26, %s935_s27  }
   0xd   :  { %927 = dma.done.wait [#allocation4], 2048  }
   0xe   :  { %928 = vsyncadd [#allocation4], 4294965248 }
   0xf   :  { %929 = dma.done.wait [#allocation7], 2048  }
  0x10   :  { %930 = vsyncadd [#allocation7], 4294965248  ;;  %v709_v0 = vld [vmem:[#allocation6 + $0x38] sm:$0xff]  ;;  %v708_v1 = vld [vmem:[#allocation6 + $0x30] sm:$0xff] }
  0x11   :  { %164 = vmatpush.bf16.msra.mxu0 %v709_v0  ;;  %773 = vmatpush.bf16.msra.mxu2 %v709_v0  ;;  %v707_v2 = vld [vmem:[#allocation6 + $0x28] sm:$0xff]  ;;  %v706_v3 = vld [vmem:[#allocation6 + $0x20] sm:$0xff]  ;;  %v705_v4 = vld [vmem:[#allocation6 + $0x18] sm:$0xff] }
  0x12   :  { %v704_v5 = vld [vmem:[#allocation6 + $0x10] sm:$0xff]  ;;  %v703_v6 = vld [vmem:[#allocation6 + $0x8] sm:$0xff]  ;;  %v702_v7 = vld [vmem:[#allocation6] sm:$0xff] }
  0x13   :  { %v72_v8 = vld [vmem:[#allocation3] sm:$0xff]  ;;  %v73_v9 = vld [vmem:[#allocation3 + $0x8] sm:$0xff]  ;;  %v74_v14 = vld [vmem:[#allocation3 + $0x10] sm:$0xff] }
  0x14   :  { %v80_v10 = vld [vmem:[#allocation3 + $0x40] sm:$0xff]  ;;  %v81_v11 = vld [vmem:[#allocation3 + $0x48] sm:$0xff]  ;;  %v88_v12 = vpack.c.bf16 %v73_v9, %v72_v8  ;;  %v75_v15 = vld [vmem:[#allocation3 + $0x18] sm:$0xff] }
  0x15   :  { %165 = vmatpush.bf16.msra.mxu0 %v708_v1  ;;  %774 = vmatpush.bf16.msra.mxu2 %v708_v1  ;;  %v92_v13 = vpack.c.bf16 %v81_v11, %v80_v10  ;;  %v82_v16 = vld [vmem:[#allocation3 + $0x50] sm:$0xff]  ;;  %v83_v17 = vld [vmem:[#allocation3 + $0x58] sm:$0xff]  ;;  %v89_v18 = vpack.c.bf16 %v75_v15, %v74_v14  ;;  %v76_v20 = vld [vmem:[#allocation3 + $0x20] sm:$0xff] }
  0x16   :  { %v93_v19 = vpack.c.bf16 %v83_v17, %v82_v16  ;;  %v77_v21 = vld [vmem:[#allocation3 + $0x28] sm:$0xff]  ;;  %v84_v22 = vld [vmem:[#allocation3 + $0x60] sm:$0xff]  ;;  %v78_v26 = vld [vmem:[#allocation3 + $0x30] sm:$0xff] }
  0x17   :  { %v85_v23 = vld [vmem:[#allocation3 + $0x68] sm:$0xff]  ;;  %v90_v24 = vpack.c.bf16 %v77_v21, %v76_v20  ;;  %v79_v27 = vld [vmem:[#allocation3 + $0x38] sm:$0xff]  ;;  %v86_v28 = vld [vmem:[#allocation3 + $0x70] sm:$0xff] }
  0x18   :  { %v94_v25 = vpack.c.bf16 %v85_v23, %v84_v22  ;;  %v87_v29 = vld [vmem:[#allocation3 + $0x78] sm:$0xff]  ;;  %v91_v30 = vpack.c.bf16 %v79_v27, %v78_v26  ;;  %v724_v33 = vld [vmem:[#allocation8 + $0x30] sm:$0xff]  ;;  %v723_v34 = vld [vmem:[#allocation8 + $0x28] sm:$0xff] }
  0x19   :  { %166 = vmatpush.bf16.msra.mxu0 %v707_v2  ;;  %775 = vmatpush.bf16.msra.mxu2 %v707_v2  ;;  %v95_v31 = vpack.c.bf16 %v87_v29, %v86_v28  ;;  %v725_v32 = vld [vmem:[#allocation8 + $0x38] sm:$0xff]  ;;  %v722_v35 = vld [vmem:[#allocation8 + $0x20] sm:$0xff]  ;;  %v720_v38 = vld [vmem:[#allocation8 + $0x10] sm:$0xff] }
  0x1a   :  { %521 = vmatpush.bf16.msra.mxu1 %v725_v32  ;;  %781 = vmatpush.bf16.msra.mxu3 %v725_v32  ;;  %v721_v36 = vld [vmem:[#allocation8 + $0x18] sm:$0xff]  ;;  %v986_v37 = vld [vmem:[%s1085_s2] ss:$0 sm:$0xff]  ;;  %v719_v42 = vld [vmem:[#allocation8 + $0x8] sm:$0xff] }
  0x1b   :  { %v718_v47 = vld [vmem:[#allocation8] sm:$0xff] }
  0x1d   :  { %167 = vmatpush.bf16.msra.mxu0 %v706_v3  ;;  %776 = vmatpush.bf16.msra.mxu2 %v706_v3 }
  0x1e   :  { %522 = vmatpush.bf16.msra.mxu1 %v724_v33  ;;  %782 = vmatpush.bf16.msra.mxu3 %v724_v33 }
  0x21   :  { %168 = vmatpush.bf16.msra.mxu0 %v705_v4  ;;  %777 = vmatpush.bf16.msra.mxu2 %v705_v4 }
  0x22   :  { %523 = vmatpush.bf16.msra.mxu1 %v723_v34  ;;  %783 = vmatpush.bf16.msra.mxu3 %v723_v34 }
  0x25   :  { %169 = vmatpush.bf16.msra.mxu0 %v704_v5  ;;  %778 = vmatpush.bf16.msra.mxu2 %v704_v5 }
  0x26   :  { %524 = vmatpush.bf16.msra.mxu1 %v722_v35  ;;  %784 = vmatpush.bf16.msra.mxu3 %v722_v35 }
  0x29   :  { %170 = vmatpush.bf16.msra.mxu0 %v703_v6  ;;  %779 = vmatpush.bf16.msra.mxu2 %v703_v6 }
  0x2a   :  { %525 = vmatpush.bf16.msra.mxu1 %v721_v36  ;;  %785 = vmatpush.bf16.msra.mxu3 %v721_v36 }
  0x2d   :  { %171 = vmatpush.bf16.msra.mxu0 %v702_v7  ;;  %780 = vmatpush.bf16.msra.mxu2 %v702_v7 }
  0x2e   :  { %526 = vmatpush.bf16.msra.mxu1 %v720_v38  ;;  %786 = vmatpush.bf16.msra.mxu3 %v720_v38 }
  0x30   :  { %172 = vmatmul.bf16.vlgmr.msra.gmra.mxu0 %v88_v12  ;;  %192 = vmatmul.bf16.vlgmr.msra.gmra.mxu2 %v92_v13 }
  0x32   :  { %527 = vmatpush.bf16.msra.mxu1 %v719_v42  ;;  %787 = vmatpush.bf16.msra.mxu3 %v719_v42 }
  0x36   :  { %528 = vmatpush.bf16.msra.mxu1 %v718_v47  ;;  %788 = vmatpush.bf16.msra.mxu3 %v718_v47 }
  0x40   :  { %177 = vmatmul.bf16.gmra.mxu0 %v89_v18  ;;  %197 = vmatmul.bf16.gmra.mxu2 %v93_v19 }
  0x50   :  { %182 = vmatmul.bf16.gmra.mxu0 %v90_v24  ;;  %202 = vmatmul.bf16.gmra.mxu2 %v94_v25 }
  0x60   :  { %187 = vmatmul.bf16.gmra.mxu0 %v91_v30  ;;  %207 = vmatmul.bf16.gmra.mxu2 %v95_v31 }
  0xad   :  { %v173_v39 = vpop.f32.mrf.mxu0 }
  0xae   :  { %v174_v40 = vadd.f32 %v986_v37, %v173_v39 }
  0xb0   :  { %v229_v41 = vmul.f32 0.044715, %v174_v40  ;;  %v213_v21 = vmul.f32 0.5, %v174_v40 }
  0xb2   :  { %v245_v43 = vmul.f32 %v229_v41, %v174_v40 }
  0xb3   :  { %v193_v44 = vpop.f32.mrf.mxu2 }
  0xb4   :  { %v261_v45 = vmul.f32 %v245_v43, %v174_v40  ;;  %v990_v46 = vadd.f32 %v986_v37, %v193_v44 }
  0xb5   :  { %v175_v48 = vpop.f32.mrf.mxu0 }
  0xb6   :  { %v277_v49 = vadd.f32 %v261_v45, %v174_v40  ;;  %v237_v50 = vmul.f32 0.044715, %v990_v46  ;;  %v176_v51 = vadd.f32 %v986_v37, %v175_v48  ;;  %v221_v41 = vmul.f32 0.5, %v990_v46 }
  0xb8   :  { %v253_v52 = vmul.f32 %v237_v50, %v990_v46  ;;  %v230_v53 = vmul.f32 0.044715, %v176_v51  ;;  %v293_v54 = vmul.f32 0.7978846, %v277_v49  ;;  %v214_v22 = vmul.f32 0.5, %v176_v51 }
  0xba   :  { %v269_v55 = vmul.f32 %v253_v52, %v990_v46  ;;  %v246_v56 = vmul.f32 %v230_v53, %v176_v51  ;;  %799 = vtanh.f32 %v293_v54 }
  0xbb   :  { %v195_v57 = vpop.f32.mrf.mxu2 }
  0xbc   :  { %v285_v58 = vadd.f32 %v269_v55, %v990_v46  ;;  %v262_v59 = vmul.f32 %v246_v56, %v176_v51  ;;  %v196_v60 = vadd.f32 %v986_v37, %v195_v57 }
  0xbd   :  { %v178_v61 = vpop.f32.mrf.mxu0 }
  0xbe   :  { %v278_v62 = vadd.f32 %v262_v59, %v176_v51  ;;  %v238_v63 = vmul.f32 0.044715, %v196_v60  ;;  %v999_v0 = vadd.f32 %v986_v37, %v178_v61  ;;  %v301_v1 = vmul.f32 0.7978846, %v285_v58 }
  0xbf   :  { %v222_v42 = vmul.f32 0.5, %v196_v60 }
  0xc0   :  { %v294_v2 = vmul.f32 0.7978846, %v278_v62  ;;  %v254_v3 = vmul.f32 %v238_v63, %v196_v60  ;;  %v231_v4 = vmul.f32 0.044715, %v999_v0  ;;  %v800_v8 = vpop.eup %799 }
  0xc1   :  { %v325_v16 = vadd.f32 1.0, %v800_v8 }
  0xc2   :  { %801 = vtanh.f32 %v294_v2  ;;  %v270_v5 = vmul.f32 %v254_v3, %v196_v60  ;;  %v247_v6 = vmul.f32 %v231_v4, %v999_v0 }
  0xc3   :  { %v198_v7 = vpop.f32.mrf.mxu2  ;;  %803 = vtanh.f32 %v301_v1  ;;  %v341_v28 = vmul.f32 %v325_v16, %v213_v21 }
  0xc4   :  { %v286_v9 = vadd.f32 %v270_v5, %v196_v60  ;;  %v1004_v10 = vadd.f32 %v986_v37, %v198_v7  ;;  %v263_v11 = vmul.f32 %v247_v6, %v999_v0  ;;  %v215_v6 = vmul.f32 0.5, %v999_v0 }
  0xc5   :  { %v180_v12 = vpop.f32.mrf.mxu0 }
  0xc6   :  { %v302_v13 = vmul.f32 0.7978846, %v286_v9  ;;  %v239_v14 = vmul.f32 0.044715, %v1004_v10  ;;  %v181_v15 = vadd.f32 %v986_v37, %v180_v12  ;;  %v279_v17 = vadd.f32 %v263_v11, %v999_v0 }
  0xc8   :  { %v802_v18 = vpop.eup %801  ;;  %805 = vtanh.f32 %v302_v13  ;;  %v255_v19 = vmul.f32 %v239_v14, %v1004_v10  ;;  %v232_v20 = vmul.f32 0.044715, %v181_v15  ;;  %v295_v25 = vmul.f32 0.7978846, %v279_v17 }
  0xc9   :  { %v326_v23 = vadd.f32 1.0, %v802_v18  ;;  %v804_v24 = vpop.eup %803  ;;  %v216_v7 = vmul.f32 0.5, %v181_v15 }
  0xca   :  { %v271_v26 = vmul.f32 %v255_v19, %v1004_v10  ;;  %v248_v27 = vmul.f32 %v232_v20, %v181_v15  ;;  %v333_v34 = vadd.f32 1.0, %v804_v24  ;;  %807 = vtanh.f32 %v295_v25 }
  0xcb   :  { %v342_v29 = vmul.f32 %v326_v23, %v214_v22  ;;  %v200_v30 = vpop.f32.mrf.mxu2 }
  0xcc   :  { %v287_v31 = vadd.f32 %v271_v26, %v1004_v10  ;;  %v264_v32 = vmul.f32 %v248_v27, %v181_v15  ;;  %v1014_v33 = vadd.f32 %v986_v37, %v200_v30  ;;  %v349_v49 = vmul.f32 %v333_v34, %v221_v41 }
  0xcd   :  { %v729_v35 = vpack.c.bf16 %v342_v29, %v341_v28  ;;  %v183_v36 = vpop.f32.mrf.mxu0  ;;  %v223_v26 = vmul.f32 0.5, %v1004_v10 }
  0xce   :  { %v806_v38 = vpop.eup %805  ;;  %v280_v39 = vadd.f32 %v264_v32, %v181_v15  ;;  %v240_v40 = vmul.f32 0.044715, %v1014_v33  ;;  %v1019_v44 = vadd.f32 %v986_v37, %v183_v36  ;;  %v303_v45 = vmul.f32 0.7978846, %v287_v31 }
  0xcf   :  { %730 = vst [vmem:[#allocation2 + $0x30] sm:$0xff] %v729_v35   ;;  %v334_v43 = vadd.f32 1.0, %v806_v38  ;;  %v224_v27 = vmul.f32 0.5, %v1014_v33 }
  0xd0   :  { %v296_v47 = vmul.f32 0.7978846, %v280_v39  ;;  %v256_v48 = vmul.f32 %v240_v40, %v1014_v33  ;;  %v233_v51 = vmul.f32 0.044715, %v1019_v44  ;;  %v808_v55 = vpop.eup %807 }
  0xd1   :  { %v350_v50 = vmul.f32 %v334_v43, %v222_v42  ;;  %v327_v1 = vadd.f32 1.0, %v808_v55  ;;  %v217_v55 = vmul.f32 0.5, %v1019_v44 }
  0xd2   :  { %809 = vtanh.f32 %v296_v47  ;;  %v272_v52 = vmul.f32 %v256_v48, %v1014_v33  ;;  %v249_v46 = vmul.f32 %v233_v51, %v1019_v44 }
  0xd3   :  { %v749_v53 = vpack.c.bf16 %v350_v50, %v349_v49  ;;  %v203_v54 = vpop.f32.mrf.mxu2  ;;  %811 = vtanh.f32 %v303_v45  ;;  %v343_v14 = vmul.f32 %v327_v1, %v215_v6 }
  0xd4   :  { %v288_v56 = vadd.f32 %v272_v52, %v1014_v33  ;;  %v1027_v57 = vadd.f32 %v986_v37, %v203_v54  ;;  %v265_v58 = vmul.f32 %v249_v46, %v1019_v44 }
  0xd5   :  { %769 = vst [vmem:[#allocation2 + $0x8] sm:$0xff] %v749_v53   ;;  %v185_v59 = vpop.f32.mrf.mxu0 }
  0xd6   :  { %v304_v60 = vmul.f32 0.7978846, %v288_v56  ;;  %v241_v61 = vmul.f32 0.044715, %v1027_v57  ;;  %v1032_v62 = vadd.f32 %v986_v37, %v185_v59  ;;  %v710_v63 = vld [vmem:[#allocation2 + $0x30] sm:$0xff]  ;;  %v281_v2 = vadd.f32 %v265_v58, %v1019_v44 }
  0xd7   :  { %529 = vmatmul.bf16.vlgmr.msra.gmra.mxu1 %v710_v63 }
  0xd8   :  { %v810_v3 = vpop.eup %809  ;;  %813 = vtanh.f32 %v304_v60  ;;  %v257_v4 = vmul.f32 %v241_v61, %v1027_v57  ;;  %v234_v5 = vmul.f32 0.044715, %v1032_v62  ;;  %v297_v11 = vmul.f32 0.7978846, %v281_v2 }
  0xd9   :  { %v328_v8 = vadd.f32 1.0, %v810_v3  ;;  %v812_v9 = vpop.eup %811  ;;  %v218_v56 = vmul.f32 0.5, %v1032_v62 }
  0xda   :  { %v273_v12 = vmul.f32 %v257_v4, %v1027_v57  ;;  %v250_v13 = vmul.f32 %v234_v5, %v1032_v62  ;;  %v335_v0 = vadd.f32 1.0, %v812_v9  ;;  %815 = vtanh.f32 %v297_v11 }
  0xdb   :  { %v344_v16 = vmul.f32 %v328_v8, %v216_v7  ;;  %v205_v17 = vpop.f32.mrf.mxu2 }
  0xdc   :  { %v289_v18 = vadd.f32 %v273_v12, %v1027_v57  ;;  %v266_v19 = vmul.f32 %v250_v13, %v1032_v62  ;;  %v1043_v20 = vadd.f32 %v986_v37, %v205_v17  ;;  %v714_v21 = vld [vmem:[#allocation2 + $0x8] sm:$0xff]  ;;  %v351_v34 = vmul.f32 %v335_v0, %v223_v26 }
  0xdd   :  { %v734_v15 = vpack.c.bf16 %v344_v16, %v343_v14  ;;  %v188_v22 = vpop.f32.mrf.mxu0  ;;  %549 = vmatmul.bf16.vlgmr.msra.gmra.mxu3 %v714_v21  ;;  %v225_v12 = vmul.f32 0.5, %v1027_v57 }
  0xde   :  { %v814_v23 = vpop.eup %813  ;;  %v282_v24 = vadd.f32 %v266_v19, %v1032_v62  ;;  %v242_v25 = vmul.f32 0.044715, %v1043_v20  ;;  %v1050_v29 = vadd.f32 %v986_v37, %v188_v22  ;;  %v305_v30 = vmul.f32 0.7978846, %v289_v18 }
  0xdf   :  { %766 = vst [vmem:[#allocation2] sm:$0xff] %v734_v15   ;;  %v336_v28 = vadd.f32 1.0, %v814_v23  ;;  %v226_v13 = vmul.f32 0.5, %v1043_v20 }
  0xe0   :  { %v298_v31 = vmul.f32 0.7978846, %v282_v24  ;;  %v258_v32 = vmul.f32 %v242_v25, %v1043_v20  ;;  %v235_v36 = vmul.f32 0.044715, %v1050_v29  ;;  %v816_v33 = vpop.eup %815 }
  0xe1   :  { %v352_v35 = vmul.f32 %v336_v28, %v224_v27  ;;  %v329_v51 = vadd.f32 1.0, %v816_v33 }
  0xe2   :  { %817 = vtanh.f32 %v298_v31  ;;  %v274_v38 = vmul.f32 %v258_v32, %v1043_v20  ;;  %v251_v10 = vmul.f32 %v235_v36, %v1050_v29 }
  0xe3   :  { %v754_v39 = vpack.c.bf16 %v352_v35, %v351_v34  ;;  %v208_v40 = vpop.f32.mrf.mxu2  ;;  %819 = vtanh.f32 %v305_v30  ;;  %v345_v1 = vmul.f32 %v329_v51, %v217_v55 }
  0xe4   :  { %v290_v41 = vadd.f32 %v274_v38, %v1043_v20  ;;  %v1058_v42 = vadd.f32 %v986_v37, %v208_v40  ;;  %v267_v43 = vmul.f32 %v251_v10, %v1050_v29  ;;  %v219_v20 = vmul.f32 0.5, %v1050_v29 }
  0xe5   :  { %770 = vst [vmem:[#allocation2 + $0x20] sm:$0xff] %v754_v39   ;;  %v190_v45 = vpop.f32.mrf.mxu0 }
  0xe6   :  { %v306_v47 = vmul.f32 0.7978846, %v290_v41  ;;  %v243_v48 = vmul.f32 0.044715, %v1058_v42  ;;  %v191_v49 = vadd.f32 %v986_v37, %v190_v45  ;;  %v711_v50 = vld [vmem:[#allocation2] sm:$0xff]  ;;  %v283_v52 = vadd.f32 %v267_v43, %v1050_v29 }
  0xe7   :  { %534 = vmatmul.bf16.gmra.mxu1 %v711_v50  ;;  %v227_v38 = vmul.f32 0.5, %v1058_v42  ;;  %v798_v45 = vld [vmem:[%s1087_s4] ss:$0 sm:$0xff] }
  0xe8   :  { %v818_v53 = vpop.eup %817  ;;  %821 = vtanh.f32 %v306_v47  ;;  %v259_v46 = vmul.f32 %v243_v48, %v1058_v42  ;;  %v236_v54 = vmul.f32 0.044715, %v191_v49  ;;  %v299_v60 = vmul.f32 0.7978846, %v283_v52 }
  0xe9   :  { %v330_v58 = vadd.f32 1.0, %v818_v53  ;;  %v820_v59 = vpop.eup %819  ;;  %v220_v26 = vmul.f32 0.5, %v191_v49 }
  0xea   :  { %v275_v61 = vmul.f32 %v259_v46, %v1058_v42  ;;  %v252_v63 = vmul.f32 %v236_v54, %v191_v49  ;;  %v337_v8 = vadd.f32 1.0, %v820_v59  ;;  %823 = vtanh.f32 %v299_v60 }
  0xeb   :  { %v346_v2 = vmul.f32 %v330_v58, %v218_v56  ;;  %v210_v3 = vpop.f32.mrf.mxu2 }
  0xec   :  { %v291_v4 = vadd.f32 %v275_v61, %v1058_v42  ;;  %v268_v5 = vmul.f32 %v252_v63, %v191_v49  ;;  %v211_v6 = vadd.f32 %v986_v37, %v210_v3  ;;  %v715_v7 = vld [vmem:[#allocation2 + $0x20] sm:$0xff]  ;;  %v353_v19 = vmul.f32 %v337_v8, %v225_v12 }
  0xed   :  { %v739_v9 = vpack.c.bf16 %v346_v2, %v345_v1  ;;  %554 = vmatmul.bf16.gmra.mxu3 %v715_v7 }
  0xee   :  { %v822_v44 = vpop.eup %821  ;;  %v284_v62 = vadd.f32 %v268_v5, %v191_v49  ;;  %v244_v11 = vmul.f32 0.044715, %v211_v6  ;;  %v307_v16 = vmul.f32 0.7978846, %v291_v4  ;;  %v228_v39 = vmul.f32 0.5, %v211_v6 }
  0xef   :  { %767 = vst [vmem:[#allocation2 + $0x18] sm:$0xff] %v739_v9   ;;  %v338_v14 = vadd.f32 1.0, %v822_v44 }
  0xf0   :  { %v300_v17 = vmul.f32 0.7978846, %v284_v62  ;;  %v260_v18 = vmul.f32 %v244_v11, %v211_v6  ;;  %v824_v15 = vpop.eup %823 }
  0xf1   :  { %v354_v21 = vmul.f32 %v338_v14, %v226_v13  ;;  %v331_v25 = vadd.f32 1.0, %v824_v15 }
  0xf2   :  { %825 = vtanh.f32 %v300_v17  ;;  %v276_v37 = vmul.f32 %v260_v18, %v211_v6 }
  0xf3   :  { %v759_v0 = vpack.c.bf16 %v354_v21, %v353_v19  ;;  %827 = vtanh.f32 %v307_v16  ;;  %v347_v30 = vmul.f32 %v331_v25, %v219_v20 }
  0xf4   :  { %v292_v22 = vadd.f32 %v276_v37, %v211_v6 }
  0xf5   :  { %771 = vst [vmem:[#allocation2 + $0x28] sm:$0xff] %v759_v0  }
  0xf6   :  { %v308_v23 = vmul.f32 0.7978846, %v292_v22  ;;  %v712_v24 = vld [vmem:[#allocation2 + $0x18] sm:$0xff] }
  0xf7   :  { %539 = vmatmul.bf16.gmra.mxu1 %v712_v24 }
  0xf8   :  { %v826_v57 = vpop.eup %825  ;;  %829 = vtanh.f32 %v308_v23 }
  0xf9   :  { %v332_v27 = vadd.f32 1.0, %v826_v57  ;;  %v828_v28 = vpop.eup %827 }
  0xfa   :  { %v339_v34 = vadd.f32 1.0, %v828_v28 }
  0xfb   :  { %v348_v31 = vmul.f32 %v332_v27, %v220_v26 }
  0xfc   :  { %v716_v32 = vld [vmem:[#allocation2 + $0x28] sm:$0xff]  ;;  %v355_v40 = vmul.f32 %v339_v34, %v227_v38 }
  0xfd   :  { %v744_v35 = vpack.c.bf16 %v348_v31, %v347_v30  ;;  %559 = vmatmul.bf16.gmra.mxu3 %v716_v32 }
  0xfe   :  { %v830_v36 = vpop.eup %829 }
  0xff   :  { %768 = vst [vmem:[#allocation2 + $0x10] sm:$0xff] %v744_v35   ;;  %v340_v10 = vadd.f32 1.0, %v830_v36 }
 0x101   :  { %v356_v33 = vmul.f32 %v340_v10, %v228_v39 }
 0x103   :  { %v764_v41 = vpack.c.bf16 %v356_v33, %v355_v40 }
 0x105   :  { %772 = vst [vmem:[#allocation2 + $0x38] sm:$0xff] %v764_v41  }
 0x106   :  { %v713_v29 = vld [vmem:[#allocation2 + $0x10] sm:$0xff] }
 0x107   :  { %544 = vmatmul.bf16.gmra.mxu1 %v713_v29 }
 0x10c   :  { %v717_v43 = vld [vmem:[#allocation2 + $0x38] sm:$0xff] }
 0x10d   :  { %564 = vmatmul.bf16.gmra.mxu3 %v717_v43 }
 0x154   :  { %v530_v47 = vpop.f32.mrf.mxu1 }
 0x155   :  { %v531_v48 = vadd.f32 %v798_v45, %v530_v47 }
 0x157   :  { %570 = vst [vmem:[#allocation9] sm:$0xff] %v531_v48 }
 0x15c   :  { %v532_v49 = vpop.f32.mrf.mxu1 }
 0x15d   :  { %v533_v42 = vadd.f32 %v798_v45, %v532_v49 }
 0x15f   :  { %571 = vst [vmem:[#allocation9 + $0x8] sm:$0xff] %v533_v42 }
 0x160   :  { %v550_v50 = vpop.f32.mrf.mxu3 }
 0x161   :  { %v551_v51 = vadd.f32 %v798_v45, %v550_v50 }
 0x163   :  { %578 = vst [vmem:[#allocation9 + $0x40] sm:$0xff] %v551_v51 }
 0x164   :  { %v535_v52 = vpop.f32.mrf.mxu1 }
 0x165   :  { %v536_v53 = vadd.f32 %v798_v45, %v535_v52 }
 0x167   :  { %572 = vst [vmem:[#allocation9 + $0x10] sm:$0xff] %v536_v53 }
 0x168   :  { %v552_v46 = vpop.f32.mrf.mxu3 }
 0x169   :  { %v553_v54 = vadd.f32 %v798_v45, %v552_v46 }
 0x16b   :  { %579 = vst [vmem:[#allocation9 + $0x48] sm:$0xff] %v553_v54 }
 0x16c   :  { %v537_v55 = vpop.f32.mrf.mxu1 }
 0x16d   :  { %v538_v56 = vadd.f32 %v798_v45, %v537_v55 }
 0x16f   :  { %573 = vst [vmem:[#allocation9 + $0x18] sm:$0xff] %v538_v56 }
 0x170   :  { %v555_v58 = vpop.f32.mrf.mxu3 }
 0x171   :  { %v556_v59 = vadd.f32 %v798_v45, %v555_v58 }
 0x173   :  { %580 = vst [vmem:[#allocation9 + $0x50] sm:$0xff] %v556_v59 }
 0x174   :  { %v540_v60 = vpop.f32.mrf.mxu1 }
 0x175   :  { %v541_v61 = vadd.f32 %v798_v45, %v540_v60 }
 0x177   :  { %574 = vst [vmem:[#allocation9 + $0x20] sm:$0xff] %v541_v61 }
 0x178   :  { %v557_v63 = vpop.f32.mrf.mxu3 }
 0x179   :  { %v558_v1 = vadd.f32 %v798_v45, %v557_v63 }
 0x17b   :  { %581 = vst [vmem:[#allocation9 + $0x58] sm:$0xff] %v558_v1 }
 0x17c   :  { %v542_v2 = vpop.f32.mrf.mxu1 }
 0x17d   :  { %v543_v3 = vadd.f32 %v798_v45, %v542_v2 }
 0x17f   :  { %575 = vst [vmem:[#allocation9 + $0x28] sm:$0xff] %v543_v3 }
 0x180   :  { %v560_v4 = vpop.f32.mrf.mxu3 }
 0x181   :  { %v561_v5 = vadd.f32 %v798_v45, %v560_v4 }
 0x183   :  { %582 = vst [vmem:[#allocation9 + $0x60] sm:$0xff] %v561_v5 }
 0x184   :  { %v545_v6 = vpop.f32.mrf.mxu1 }
 0x185   :  { %v546_v7 = vadd.f32 %v798_v45, %v545_v6 }
 0x187   :  { %576 = vst [vmem:[#allocation9 + $0x30] sm:$0xff] %v546_v7 }
 0x188   :  { %v562_v8 = vpop.f32.mrf.mxu3 }
 0x189   :  { %v563_v9 = vadd.f32 %v798_v45, %v562_v8 }
 0x18b   :  { %583 = vst [vmem:[#allocation9 + $0x68] sm:$0xff] %v563_v9 }
 0x18c   :  { %v547_v44 = vpop.f32.mrf.mxu1 }
 0x18d   :  { %v548_v62 = vadd.f32 %v798_v45, %v547_v44 }
 0x18f   :  { %577 = vst [vmem:[#allocation9 + $0x38] sm:$0xff] %v548_v62 }
 0x190   :  { %v565_v11 = vpop.f32.mrf.mxu3 }
 0x191   :  { %v566_v12 = vadd.f32 %v798_v45, %v565_v11 }
 0x193   :  { %584 = vst [vmem:[#allocation9 + $0x70] sm:$0xff] %v566_v12 }
 0x198   :  { %v567_v13 = vpop.f32.mrf.mxu3 }
 0x199   :  { %v568_v14 = vadd.f32 %v798_v45, %v567_v13 }
 0x19b   :  { %585 = vst [vmem:[#allocation9 + $0x78] sm:$0xff] %v568_v14 }
 0x19c   :  { %589 = vsyncadd [#allocation5], 1792  ;;  %s592_s13 = sshll.u32 %s1088_s5, 4  ;;  %s940_s14 = smov [#allocation9]   ;;  %s593_s13 = int_to_ptr.hbm [resolvable:$true] %s592_s13 }
 0x19d   :  { %s590_s15 = sshll.u32 %s940_s14, 4  ;;  %s591_s15 = int_to_ptr.vmem [resolvable:$true] %s590_s15 }
 0x19e   :  { %598 = dma.vmem_to_hbm [thread:$0]  %s591_s15, 256, %s593_s13, [#allocation5], %s937_s30, %s937_s30, %s938_s6  }
 0x19f   :  { %931 = dma.done.wait [#allocation5], 2048  }
 0x1a0   :  { %932 = vsyncadd [#allocation5], 4294965248 }
 0x1a1   :  { %603 = vsyncpa [#allocation4], 1 }
 0x1a2   :  { %604 = vsyncpa [#allocation7], 1 }
 0x1a3   :  { %605 = vsyncpa [#allocation5], 1 }

// kernel: tpu_custom_call.1
= control target key start
LH: loop header
LB: loop body
LE: loop exit
PB: predicated region body
PF: predicated region fallthrough
CT: control target
= control target key end

     0   :  { %10 = vsyncpa [#allocation4], 0  ;;  %s1083_s0 = inlined_call_operand.hbm [shape: f32[16,128], index: 0, kind: input, shape index: {}]   ;;  %s1084_s1 = inlined_call_operand.hbm [shape: bf16[128,128], index: 1, kind: input, shape index: {}]   ;;  %s1085_s2 = inlined_call_operand.vmem [shape: f32[1,128], index: 2, kind: input, shape index: {}]   ;;  %s1086_s3 = inlined_call_operand.hbm [shape: bf16[128,128], index: 3, kind: input, shape index: {}]   ;;  %s1087_s4 = inlined_call_operand.vmem [shape: f32[1,128], index: 4, kind: input, shape index: {}]   ;;  %s1088_s5 = inlined_call_operand.hbm [shape: f32[16,128], index: 5, kind: output, shape index: {}]  }
   0x1   :  { %11 = vsyncpa [#allocation7], 0 }
   0x2   :  { %12 = vsyncpa [#allocation5], 0  ;;  %s30_s20 = sshll.u32 %s1084_s1, 4  ;;  %s31_s20 = int_to_ptr.hbm [resolvable:$true] %s30_s20 }
   0x3   :  { %16 = vsyncadd [#allocation4], 1792  ;;  %s933_s21 = smov [#allocation6]   ;;  %s17_s25 = sshll.u32 %s1083_s0, 4  ;;  %s18_s25 = int_to_ptr.hbm [resolvable:$true] %s17_s25 }
   0x4   :  { %s32_s22 = sshll.u32 %s933_s21, 4  ;;  %s934_s26 = smov 64   ;;  %s33_s22 = int_to_ptr.vmem [resolvable:$true] %s32_s22 }
   0x5   :  { %s935_s27 = smov 4   ;;  %s936_s28 = smov [#allocation3]  }
   0x6   :  { %38 = dma.hbm_to_vmem [thread:$0]  %s31_s20, 1024, %s33_s22, [#allocation7], %s934_s26, %s934_s26, %s935_s27  }
   0x7   :  { %s19_s29 = sshll.u32 %s936_s28, 4  ;;  %s937_s30 = smov 128   ;;  %s20_s29 = int_to_ptr.vmem [resolvable:$true] %s19_s29 }
   0x8   :  { %s938_s6 = smov 8   ;;  %s45_s8 = sshll.u32 %s1086_s3, 4  ;;  %s46_s8 = int_to_ptr.hbm [resolvable:$true] %s45_s8 }
   0x9   :  { %25 = dma.hbm_to_vmem [thread:$0]  %s18_s25, 256, %s20_s29, [#allocation4], %s937_s30, %s937_s30, %s938_s6  }
   0xa   :  { %s939_s9 = smov [#allocation8]  }
   0xb   :  { %s47_s0 = sshll.u32 %s939_s9, 4  ;;  %s48_s0 = int_to_ptr.vmem [resolvable:$true] %s47_s0 }
   0xc   :  { %53 = dma.hbm_to_vmem [thread:$0]  %s46_s8, 1024, %s48_s0, [#allocation7], %s934_s26, %s934_s26, %s935_s27  }
   0xd   :  { %927 = dma.done.wait [#allocation4], 2048  }
   0xe   :  { %928 = vsyncadd [#allocation4], 4294965248 }
   0xf   :  { %929 = dma.done.wait [#allocation7], 2048  }
  0x10   :  { %930 = vsyncadd [#allocation7], 4294965248  ;;  %v709_v0 = vld [vmem:[#allocation6 + $0x38] sm:$0xff]  ;;  %v708_v1 = vld [vmem:[#allocation6 + $0x30] sm:$0xff] }
  0x11   :  { %164 = vmatpush.bf16.msra.mxu0 %v709_v0  ;;  %773 = vmatpush.bf16.msra.mxu2 %v709_v0  ;;  %v707_v2 = vld [vmem:[#allocation6 + $0x28] sm:$0xff]  ;;  %v706_v3 = vld [vmem:[#allocation6 + $0x20] sm:$0xff]  ;;  %v705_v4 = vld [vmem:[#allocation6 + $0x18] sm:$0xff] }
  0x12   :  { %v704_v5 = vld [vmem:[#allocation6 + $0x10] sm:$0xff]  ;;  %v703_v6 = vld [vmem:[#allocation6 + $0x8] sm:$0xff]  ;;  %v702_v7 = vld [vmem:[#allocation6] sm:$0xff] }
  0x13   :  { %v72_v8 = vld [vmem:[#allocation3] sm:$0xff]  ;;  %v73_v9 = vld [vmem:[#allocation3 + $0x8] sm:$0xff]  ;;  %v74_v14 = vld [vmem:[#allocation3 + $0x10] sm:$0xff] }
  0x14   :  { %v80_v10 = vld [vmem:[#allocation3 + $0x40] sm:$0xff]  ;;  %v81_v11 = vld [vmem:[#allocation3 + $0x48] sm:$0xff]  ;;  %v88_v12 = vpack.c.bf16 %v73_v9, %v72_v8  ;;  %v75_v15 = vld [vmem:[#allocation3 + $0x18] sm:$0xff] }
  0x15   :  { %165 = vmatpush.bf16.msra.mxu0 %v708_v1  ;;  %774 = vmatpush.bf16.msra.mxu2 %v708_v1  ;;  %v92_v13 = vpack.c.bf16 %v81_v11, %v80_v10  ;;  %v82_v16 = vld [vmem:[#allocation3 + $0x50] sm:$0xff]  ;;  %v83_v17 = vld [vmem:[#allocation3 + $0x58] sm:$0xff]  ;;  %v89_v18 = vpack.c.bf16 %v75_v15, %v74_v14  ;;  %v76_v20 = vld [vmem:[#allocation3 + $0x20] sm:$0xff] }
  0x16   :  { %v93_v19 = vpack.c.bf16 %v83_v17, %v82_v16  ;;  %v77_v21 = vld [vmem:[#allocation3 + $0x28] sm:$0xff]  ;;  %v84_v22 = vld [vmem:[#allocation3 + $0x60] sm:$0xff]  ;;  %v78_v26 = vld [vmem:[#allocation3 + $0x30] sm:$0xff] }
  0x17   :  { %v85_v23 = vld [vmem:[#allocation3 + $0x68] sm:$0xff]  ;;  %v90_v24 = vpack.c.bf16 %v77_v21, %v76_v20  ;;  %v79_v27 = vld [vmem:[#allocation3 + $0x38] sm:$0xff]  ;;  %v86_v28 = vld [vmem:[#allocation3 + $0x70] sm:$0xff] }
  0x18   :  { %v94_v25 = vpack.c.bf16 %v85_v23, %v84_v22  ;;  %v87_v29 = vld [vmem:[#allocation3 + $0x78] sm:$0xff]  ;;  %v91_v30 = vpack.c.bf16 %v79_v27, %v78_v26  ;;  %v724_v33 = vld [vmem:[#allocation8 + $0x30] sm:$0xff]  ;;  %v723_v34 = vld [vmem:[#allocation8 + $0x28] sm:$0xff] }
  0x19   :  { %166 = vmatpush.bf16.msra.mxu0 %v707_v2  ;;  %775 = vmatpush.bf16.msra.mxu2 %v707_v2  ;;  %v95_v31 = vpack.c.bf16 %v87_v29, %v86_v28  ;;  %v725_v32 = vld [vmem:[#allocation8 + $0x38] sm:$0xff]  ;;  %v722_v35 = vld [vmem:[#allocation8 + $0x20] sm:$0xff]  ;;  %v720_v38 = vld [vmem:[#allocation8 + $0x10] sm:$0xff] }
  0x1a   :  { %521 = vmatpush.bf16.msra.mxu1 %v725_v32  ;;  %781 = vmatpush.bf16.msra.mxu3 %v725_v32  ;;  %v721_v36 = vld [vmem:[#allocation8 + $0x18] sm:$0xff]  ;;  %v986_v37 = vld [vmem:[%s1085_s2] ss:$0 sm:$0xff]  ;;  %v719_v42 = vld [vmem:[#allocation8 + $0x8] sm:$0xff] }
  0x1b   :  { %v718_v47 = vld [vmem:[#allocation8] sm:$0xff] }
  0x1d   :  { %167 = vmatpush.bf16.msra.mxu0 %v706_v3  ;;  %776 = vmatpush.bf16.msra.mxu2 %v706_v3 }
  0x1e   :  { %522 = vmatpush.bf16.msra.mxu1 %v724_v33  ;;  %782 = vmatpush.bf16.msra.mxu3 %v724_v33 }
  0x21   :  { %168 = vmatpush.bf16.msra.mxu0 %v705_v4  ;;  %777 = vmatpush.bf16.msra.mxu2 %v705_v4 }
  0x22   :  { %523 = vmatpush.bf16.msra.mxu1 %v723_v34  ;;  %783 = vmatpush.bf16.msra.mxu3 %v723_v34 }
  0x25   :  { %169 = vmatpush.bf16.msra.mxu0 %v704_v5  ;;  %778 = vmatpush.bf16.msra.mxu2 %v704_v5 }
  0x26   :  { %524 = vmatpush.bf16.msra.mxu1 %v722_v35  ;;  %784 = vmatpush.bf16.msra.mxu3 %v722_v35 }
  0x29   :  { %170 = vmatpush.bf16.msra.mxu0 %v703_v6  ;;  %779 = vmatpush.bf16.msra.mxu2 %v703_v6 }
  0x2a   :  { %525 = vmatpush.bf16.msra.mxu1 %v721_v36  ;;  %785 = vmatpush.bf16.msra.mxu3 %v721_v36 }
  0x2d   :  { %171 = vmatpush.bf16.msra.mxu0 %v702_v7  ;;  %780 = vmatpush.bf16.msra.mxu2 %v702_v7 }
  0x2e   :  { %526 = vmatpush.bf16.msra.mxu1 %v720_v38  ;;  %786 = vmatpush.bf16.msra.mxu3 %v720_v38 }
  0x30   :  { %172 = vmatmul.bf16.vlgmr.msra.gmra.mxu0 %v88_v12  ;;  %192 = vmatmul.bf16.vlgmr.msra.gmra.mxu2 %v92_v13 }
  0x32   :  { %527 = vmatpush.bf16.msra.mxu1 %v719_v42  ;;  %787 = vmatpush.bf16.msra.mxu3 %v719_v42 }
  0x36   :  { %528 = vmatpush.bf16.msra.mxu1 %v718_v47  ;;  %788 = vmatpush.bf16.msra.mxu3 %v718_v47 }
  0x40   :  { %177 = vmatmul.bf16.gmra.mxu0 %v89_v18  ;;  %197 = vmatmul.bf16.gmra.mxu2 %v93_v19 }
  0x50   :  { %182 = vmatmul.bf16.gmra.mxu0 %v90_v24  ;;  %202 = vmatmul.bf16.gmra.mxu2 %v94_v25 }
  0x60   :  { %187 = vmatmul.bf16.gmra.mxu0 %v91_v30  ;;  %207 = vmatmul.bf16.gmra.mxu2 %v95_v31 }
  0xad   :  { %v173_v39 = vpop.f32.mrf.mxu0 }
  0xae   :  { %v174_v40 = vadd.f32 %v986_v37, %v173_v39 }
  0xb0   :  { %v229_v41 = vmul.f32 0.044715, %v174_v40  ;;  %v213_v21 = vmul.f32 0.5, %v174_v40 }
  0xb2   :  { %v245_v43 = vmul.f32 %v229_v41, %v174_v40 }
  0xb3   :  { %v193_v44 = vpop.f32.mrf.mxu2 }
  0xb4   :  { %v261_v45 = vmul.f32 %v245_v43, %v174_v40  ;;  %v990_v46 = vadd.f32 %v986_v37, %v193_v44 }
  0xb5   :  { %v175_v48 = vpop.f32.mrf.mxu0 }
  0xb6   :  { %v277_v49 = vadd.f32 %v261_v45, %v174_v40  ;;  %v237_v50 = vmul.f32 0.044715, %v990_v46  ;;  %v176_v51 = vadd.f32 %v986_v37, %v175_v48  ;;  %v221_v41 = vmul.f32 0.5, %v990_v46 }
  0xb8   :  { %v253_v52 = vmul.f32 %v237_v50, %v990_v46  ;;  %v230_v53 = vmul.f32 0.044715, %v176_v51  ;;  %v293_v54 = vmul.f32 0.7978846, %v277_v49  ;;  %v214_v22 = vmul.f32 0.5, %v176_v51 }
  0xba   :  { %v269_v55 = vmul.f32 %v253_v52, %v990_v46  ;;  %v246_v56 = vmul.f32 %v230_v53, %v176_v51  ;;  %799 = vtanh.f32 %v293_v54 }
  0xbb   :  { %v195_v57 = vpop.f32.mrf.mxu2 }
  0xbc   :  { %v285_v58 = vadd.f32 %v269_v55, %v990_v46  ;;  %v262_v59 = vmul.f32 %v246_v56, %v176_v51  ;;  %v196_v60 = vadd.f32 %v986_v37, %v195_v57 }
  0xbd   :  { %v178_v61 = vpop.f32.mrf.mxu0 }
  0xbe   :  { %v278_v62 = vadd.f32 %v262_v59, %v176_v51  ;;  %v238_v63 = vmul.f32 0.044715, %v196_v60  ;;  %v999_v0 = vadd.f32 %v986_v37, %v178_v61  ;;  %v301_v1 = vmul.f32 0.7978846, %v285_v58 }
  0xbf   :  { %v222_v42 = vmul.f32 0.5, %v196_v60 }
  0xc0   :  { %v294_v2 = vmul.f32 0.7978846, %v278_v62  ;;  %v254_v3 = vmul.f32 %v238_v63, %v196_v60  ;;  %v231_v4 = vmul.f32 0.044715, %v999_v0  ;;  %v800_v8 = vpop.eup %799 }
  0xc1   :  { %v325_v16 = vadd.f32 1.0, %v800_v8 }
  0xc2   :  { %801 = vtanh.f32 %v294_v2  ;;  %v270_v5 = vmul.f32 %v254_v3, %v196_v60  ;;  %v247_v6 = vmul.f32 %v231_v4, %v999_v0 }
  0xc3   :  { %v198_v7 = vpop.f32.mrf.mxu2  ;;  %803 = vtanh.f32 %v301_v1  ;;  %v341_v28 = vmul.f32 %v325_v16, %v213_v21 }
  0xc4   :  { %v286_v9 = vadd.f32 %v270_v5, %v196_v60  ;;  %v1004_v10 = vadd.f32 %v986_v37, %v198_v7  ;;  %v263_v11 = vmul.f32 %v247_v6, %v999_v0  ;;  %v215_v6 = vmul.f32 0.5, %v999_v0 }
  0xc5   :  { %v180_v12 = vpop.f32.mrf.mxu0 }
  0xc6   :  { %v302_v13 = vmul.f32 0.7978846, %v286_v9  ;;  %v239_v14 = vmul.f32 0.044715, %v1004_v10  ;;  %v181_v15 = vadd.f32 %v986_v37, %v180_v12  ;;  %v279_v17 = vadd.f32 %v263_v11, %v999_v0 }
  0xc8   :  { %v802_v18 = vpop.eup %801  ;;  %805 = vtanh.f32 %v302_v13  ;;  %v255_v19 = vmul.f32 %v239_v14, %v1004_v10  ;;  %v232_v20 = vmul.f32 0.044715, %v181_v15  ;;  %v295_v25 = vmul.f32 0.7978846, %v279_v17 }
  0xc9   :  { %v326_v23 = vadd.f32 1.0, %v802_v18  ;;  %v804_v24 = vpop.eup %803  ;;  %v216_v7 = vmul.f32 0.5, %v181_v15 }
  0xca   :  { %v271_v26 = vmul.f32 %v255_v19, %v1004_v10  ;;  %v248_v27 = vmul.f32 %v232_v20, %v181_v15  ;;  %v333_v34 = vadd.f32 1.0, %v804_v24  ;;  %807 = vtanh.f32 %v295_v25 }
  0xcb   :  { %v342_v29 = vmul.f32 %v326_v23, %v214_v22  ;;  %v200_v30 = vpop.f32.mrf.mxu2 }
  0xcc   :  { %v287_v31 = vadd.f32 %v271_v26, %v1004_v10  ;;  %v264_v32 = vmul.f32 %v248_v27, %v181_v15  ;;  %v1014_v33 = vadd.f32 %v986_v37, %v200_v30  ;;  %v349_v49 = vmul.f32 %v333_v34, %v221_v41 }
  0xcd   :  { %v729_v35 = vpack.c.bf16 %v342_v29, %v341_v28  ;;  %v183_v36 = vpop.f32.mrf.mxu0  ;;  %v223_v26 = vmul.f32 0.5, %v1004_v10 }
  0xce   :  { %v806_v38 = vpop.eup %805  ;;  %v280_v39 = vadd.f32 %v264_v32, %v181_v15  ;;  %v240_v40 = vmul.f32 0.044715, %v1014_v33  ;;  %v1019_v44 = vadd.f32 %v986_v37, %v183_v36  ;;  %v303_v45 = vmul.f32 0.7978846, %v287_v31 }
  0xcf   :  { %730 = vst [vmem:[#allocation2 + $0x30] sm:$0xff] %v729_v35   ;;  %v334_v43 = vadd.f32 1.0, %v806_v38  ;;  %v224_v27 = vmul.f32 0.5, %v1014_v33 }
  0xd0   :  { %v296_v47 = vmul.f32 0.7978846, %v280_v39  ;;  %v256_v48 = vmul.f32 %v240_v40, %v1014_v33  ;;  %v233_v51 = vmul.f32 0.044715, %v1019_v44  ;;  %v808_v55 = vpop.eup %807 }
  0xd1   :  { %v350_v50 = vmul.f32 %v334_v43, %v222_v42  ;;  %v327_v1 = vadd.f32 1.0, %v808_v55  ;;  %v217_v55 = vmul.f32 0.5, %v1019_v44 }
  0xd2   :  { %809 = vtanh.f32 %v296_v47  ;;  %v272_v52 = vmul.f32 %v256_v48, %v1014_v33  ;;  %v249_v46 = vmul.f32 %v233_v51, %v1019_v44 }
  0xd3   :  { %v749_v53 = vpack.c.bf16 %v350_v50, %v349_v49  ;;  %v203_v54 = vpop.f32.mrf.mxu2  ;;  %811 = vtanh.f32 %v303_v45  ;;  %v343_v14 = vmul.f32 %v327_v1, %v215_v6 }
  0xd4   :  { %v288_v56 = vadd.f32 %v272_v52, %v1014_v33  ;;  %v1027_v57 = vadd.f32 %v986_v37, %v203_v54  ;;  %v265_v58 = vmul.f32 %v249_v46, %v1019_v44 }
  0xd5   :  { %769 = vst [vmem:[#allocation2 + $0x8] sm:$0xff] %v749_v53   ;;  %v185_v59 = vpop.f32.mrf.mxu0 }
  0xd6   :  { %v304_v60 = vmul.f32 0.7978846, %v288_v56  ;;  %v241_v61 = vmul.f32 0.044715, %v1027_v57  ;;  %v1032_v62 = vadd.f32 %v986_v37, %v185_v59  ;;  %v710_v63 = vld [vmem:[#allocation2 + $0x30] sm:$0xff]  ;;  %v281_v2 = vadd.f32 %v265_v58, %v1019_v44 }
  0xd7   :  { %529 = vmatmul.bf16.vlgmr.msra.gmra.mxu1 %v710_v63 }
  0xd8   :  { %v810_v3 = vpop.eup %809  ;;  %813 = vtanh.f32 %v304_v60  ;;  %v257_v4 = vmul.f32 %v241_v61, %v1027_v57  ;;  %v234_v5 = vmul.f32 0.044715, %v1032_v62  ;;  %v297_v11 = vmul.f32 0.7978846, %v281_v2 }
  0xd9   :  { %v328_v8 = vadd.f32 1.0, %v810_v3  ;;  %v812_v9 = vpop.eup %811  ;;  %v218_v56 = vmul.f32 0.5, %v1032_v62 }
  0xda   :  { %v273_v12 = vmul.f32 %v257_v4, %v1027_v57  ;;  %v250_v13 = vmul.f32 %v234_v5, %v1032_v62  ;;  %v335_v0 = vadd.f32 1.0, %v812_v9  ;;  %815 = vtanh.f32 %v297_v11 }
  0xdb   :  { %v344_v16 = vmul.f32 %v328_v8, %v216_v7  ;;  %v205_v17 = vpop.f32.mrf.mxu2 }
  0xdc   :  { %v289_v18 = vadd.f32 %v273_v12, %v1027_v57  ;;  %v266_v19 = vmul.f32 %v250_v13, %v1032_v62  ;;  %v1043_v20 = vadd.f32 %v986_v37, %v205_v17  ;;  %v714_v21 = vld [vmem:[#allocation2 + $0x8] sm:$0xff]  ;;  %v351_v34 = vmul.f32 %v335_v0, %v223_v26 }
  0xdd   :  { %v734_v15 = vpack.c.bf16 %v344_v16, %v343_v14  ;;  %v188_v22 = vpop.f32.mrf.mxu0  ;;  %549 = vmatmul.bf16.vlgmr.msra.gmra.mxu3 %v714_v21  ;;  %v225_v12 = vmul.f32 0.5, %v1027_v57 }
  0xde   :  { %v814_v23 = vpop.eup %813  ;;  %v282_v24 = vadd.f32 %v266_v19, %v1032_v62  ;;  %v242_v25 = vmul.f32 0.044715, %v1043_v20  ;;  %v1050_v29 = vadd.f32 %v986_v37, %v188_v22  ;;  %v305_v30 = vmul.f32 0.7978846, %v289_v18 }
  0xdf   :  { %766 = vst [vmem:[#allocation2] sm:$0xff] %v734_v15   ;;  %v336_v28 = vadd.f32 1.0, %v814_v23  ;;  %v226_v13 = vmul.f32 0.5, %v1043_v20 }
  0xe0   :  { %v298_v31 = vmul.f32 0.7978846, %v282_v24  ;;  %v258_v32 = vmul.f32 %v242_v25, %v1043_v20  ;;  %v235_v36 = vmul.f32 0.044715, %v1050_v29  ;;  %v816_v33 = vpop.eup %815 }
  0xe1   :  { %v352_v35 = vmul.f32 %v336_v28, %v224_v27  ;;  %v329_v51 = vadd.f32 1.0, %v816_v33 }
  0xe2   :  { %817 = vtanh.f32 %v298_v31  ;;  %v274_v38 = vmul.f32 %v258_v32, %v1043_v20  ;;  %v251_v10 = vmul.f32 %v235_v36, %v1050_v29 }
  0xe3   :  { %v754_v39 = vpack.c.bf16 %v352_v35, %v351_v34  ;;  %v208_v40 = vpop.f32.mrf.mxu2  ;;  %819 = vtanh.f32 %v305_v30  ;;  %v345_v1 = vmul.f32 %v329_v51, %v217_v55 }
  0xe4   :  { %v290_v41 = vadd.f32 %v274_v38, %v1043_v20  ;;  %v1058_v42 = vadd.f32 %v986_v37, %v208_v40  ;;  %v267_v43 = vmul.f32 %v251_v10, %v1050_v29  ;;  %v219_v20 = vmul.f32 0.5, %v1050_v29 }
  0xe5   :  { %770 = vst [vmem:[#allocation2 + $0x20] sm:$0xff] %v754_v39   ;;  %v190_v45 = vpop.f32.mrf.mxu0 }
  0xe6   :  { %v306_v47 = vmul.f32 0.7978846, %v290_v41  ;;  %v243_v48 = vmul.f32 0.044715, %v1058_v42  ;;  %v191_v49 = vadd.f32 %v986_v37, %v190_v45  ;;  %v711_v50 = vld [vmem:[#allocation2] sm:$0xff]  ;;  %v283_v52 = vadd.f32 %v267_v43, %v1050_v29 }
  0xe7   :  { %534 = vmatmul.bf16.gmra.mxu1 %v711_v50  ;;  %v227_v38 = vmul.f32 0.5, %v1058_v42  ;;  %v798_v45 = vld [vmem:[%s1087_s4] ss:$0 sm:$0xff] }
  0xe8   :  { %v818_v53 = vpop.eup %817  ;;  %821 = vtanh.f32 %v306_v47  ;;  %v259_v46 = vmul.f32 %v243_v48, %v1058_v42  ;;  %v236_v54 = vmul.f32 0.044715, %v191_v49  ;;  %v299_v60 = vmul.f32 0.7978846, %v283_v52 }
  0xe9   :  { %v330_v58 = vadd.f32 1.0, %v818_v53  ;;  %v820_v59 = vpop.eup %819  ;;  %v220_v26 = vmul.f32 0.5, %v191_v49 }
  0xea   :  { %v275_v61 = vmul.f32 %v259_v46, %v1058_v42  ;;  %v252_v63 = vmul.f32 %v236_v54, %v191_v49  ;;  %v337_v8 = vadd.f32 1.0, %v820_v59  ;;  %823 = vtanh.f32 %v299_v60 }
  0xeb   :  { %v346_v2 = vmul.f32 %v330_v58, %v218_v56  ;;  %v210_v3 = vpop.f32.mrf.mxu2 }
  0xec   :  { %v291_v4 = vadd.f32 %v275_v61, %v1058_v42  ;;  %v268_v5 = vmul.f32 %v252_v63, %v191_v49  ;;  %v211_v6 = vadd.f32 %v986_v37, %v210_v3  ;;  %v715_v7 = vld [vmem:[#allocation2 + $0x20] sm:$0xff]  ;;  %v353_v19 = vmul.f32 %v337_v8, %v225_v12 }
  0xed   :  { %v739_v9 = vpack.c.bf16 %v346_v2, %v345_v1  ;;  %554 = vmatmul.bf16.gmra.mxu3 %v715_v7 }
  0xee   :  { %v822_v44 = vpop.eup %821  ;;  %v284_v62 = vadd.f32 %v268_v5, %v191_v49  ;;  %v244_v11 = vmul.f32 0.044715, %v211_v6  ;;  %v307_v16 = vmul.f32 0.7978846, %v291_v4  ;;  %v228_v39 = vmul.f32 0.5, %v211_v6 }
  0xef   :  { %767 = vst [vmem:[#allocation2 + $0x18] sm:$0xff] %v739_v9   ;;  %v338_v14 = vadd.f32 1.0, %v822_v44 }
  0xf0   :  { %v300_v17 = vmul.f32 0.7978846, %v284_v62  ;;  %v260_v18 = vmul.f32 %v244_v11, %v211_v6  ;;  %v824_v15 = vpop.eup %823 }
  0xf1   :  { %v354_v21 = vmul.f32 %v338_v14, %v226_v13  ;;  %v331_v25 = vadd.f32 1.0, %v824_v15 }
  0xf2   :  { %825 = vtanh.f32 %v300_v17  ;;  %v276_v37 = vmul.f32 %v260_v18, %v211_v6 }
  0xf3   :  { %v759_v0 = vpack.c.bf16 %v354_v21, %v353_v19  ;;  %827 = vtanh.f32 %v307_v16  ;;  %v347_v30 = vmul.f32 %v331_v25, %v219_v20 }
  0xf4   :  { %v292_v22 = vadd.f32 %v276_v37, %v211_v6 }
  0xf5   :  { %771 = vst [vmem:[#allocation2 + $0x28] sm:$0xff] %v759_v0  }
  0xf6   :  { %v308_v23 = vmul.f32 0.7978846, %v292_v22  ;;  %v712_v24 = vld [vmem:[#allocation2 + $0x18] sm:$0xff] }
  0xf7   :  { %539 = vmatmul.bf16.gmra.mxu1 %v712_v24 }
  0xf8   :  { %v826_v57 = vpop.eup %825  ;;  %829 = vtanh.f32 %v308_v23 }
  0xf9   :  { %v332_v27 = vadd.f32 1.0, %v826_v57  ;;  %v828_v28 = vpop.eup %827 }
  0xfa   :  { %v339_v34 = vadd.f32 1.0, %v828_v28 }
  0xfb   :  { %v348_v31 = vmul.f32 %v332_v27, %v220_v26 }
  0xfc   :  { %v716_v32 = vld [vmem:[#allocation2 + $0x28] sm:$0xff]  ;;  %v355_v40 = vmul.f32 %v339_v34, %v227_v38 }
  0xfd   :  { %v744_v35 = vpack.c.bf16 %v348_v31, %v347_v30  ;;  %559 = vmatmul.bf16.gmra.mxu3 %v716_v32 }
  0xfe   :  { %v830_v36 = vpop.eup %829 }
  0xff   :  { %768 = vst [vmem:[#allocation2 + $0x10] sm:$0xff] %v744_v35   ;;  %v340_v10 = vadd.f32 1.0, %v830_v36 }
 0x101   :  { %v356_v33 = vmul.f32 %v340_v10, %v228_v39 }
 0x103   :  { %v764_v41 = vpack.c.bf16 %v356_v33, %v355_v40 }
 0x105   :  { %772 = vst [vmem:[#allocation2 + $0x38] sm:$0xff] %v764_v41  }
 0x106   :  { %v713_v29 = vld [vmem:[#allocation2 + $0x10] sm:$0xff] }
 0x107   :  { %544 = vmatmul.bf16.gmra.mxu1 %v713_v29 }
 0x10c   :  { %v717_v43 = vld [vmem:[#allocation2 + $0x38] sm:$0xff] }
 0x10d   :  { %564 = vmatmul.bf16.gmra.mxu3 %v717_v43 }
 0x154   :  { %v530_v47 = vpop.f32.mrf.mxu1 }
 0x155   :  { %v531_v48 = vadd.f32 %v798_v45, %v530_v47 }
 0x157   :  { %570 = vst [vmem:[#allocation9] sm:$0xff] %v531_v48 }
 0x15c   :  { %v532_v49 = vpop.f32.mrf.mxu1 }
 0x15d   :  { %v533_v42 = vadd.f32 %v798_v45, %v532_v49 }
 0x15f   :  { %571 = vst [vmem:[#allocation9 + $0x8] sm:$0xff] %v533_v42 }
 0x160   :  { %v550_v50 = vpop.f32.mrf.mxu3 }
 0x161   :  { %v551_v51 = vadd.f32 %v798_v45, %v550_v50 }
 0x163   :  { %578 = vst [vmem:[#allocation9 + $0x40] sm:$0xff] %v551_v51 }
 0x164   :  { %v535_v52 = vpop.f32.mrf.mxu1 }
 0x165   :  { %v536_v53 = vadd.f32 %v798_v45, %v535_v52 }
 0x167   :  { %572 = vst [vmem:[#allocation9 + $0x10] sm:$0xff] %v536_v53 }
 0x168   :  { %v552_v46 = vpop.f32.mrf.mxu3 }
 0x169   :  { %v553_v54 = vadd.f32 %v798_v45, %v552_v46 }
 0x16b   :  { %579 = vst [vmem:[#allocation9 + $0x48] sm:$0xff] %v553_v54 }
 0x16c   :  { %v537_v55 = vpop.f32.mrf.mxu1 }
 0x16d   :  { %v538_v56 = vadd.f32 %v798_v45, %v537_v55 }
 0x16f   :  { %573 = vst [vmem:[#allocation9 + $0x18] sm:$0xff] %v538_v56 }
 0x170   :  { %v555_v58 = vpop.f32.mrf.mxu3 }
 0x171   :  { %v556_v59 = vadd.f32 %v798_v45, %v555_v58 }
 0x173   :  { %580 = vst [vmem:[#allocation9 + $0x50] sm:$0xff] %v556_v59 }
 0x174   :  { %v540_v60 = vpop.f32.mrf.mxu1 }
 0x175   :  { %v541_v61 = vadd.f32 %v798_v45, %v540_v60 }
 0x177   :  { %574 = vst [vmem:[#allocation9 + $0x20] sm:$0xff] %v541_v61 }
 0x178   :  { %v557_v63 = vpop.f32.mrf.mxu3 }
 0x179   :  { %v558_v1 = vadd.f32 %v798_v45, %v557_v63 }
 0x17b   :  { %581 = vst [vmem:[#allocation9 + $0x58] sm:$0xff] %v558_v1 }
 0x17c   :  { %v542_v2 = vpop.f32.mrf.mxu1 }
 0x17d   :  { %v543_v3 = vadd.f32 %v798_v45, %v542_v2 }
 0x17f   :  { %575 = vst [vmem:[#allocation9 + $0x28] sm:$0xff] %v543_v3 }
 0x180   :  { %v560_v4 = vpop.f32.mrf.mxu3 }
 0x181   :  { %v561_v5 = vadd.f32 %v798_v45, %v560_v4 }
 0x183   :  { %582 = vst [vmem:[#allocation9 + $0x60] sm:$0xff] %v561_v5 }
 0x184   :  { %v545_v6 = vpop.f32.mrf.mxu1 }
 0x185   :  { %v546_v7 = vadd.f32 %v798_v45, %v545_v6 }
 0x187   :  { %576 = vst [vmem:[#allocation9 + $0x30] sm:$0xff] %v546_v7 }
 0x188   :  { %v562_v8 = vpop.f32.mrf.mxu3 }
 0x189   :  { %v563_v9 = vadd.f32 %v798_v45, %v562_v8 }
 0x18b   :  { %583 = vst [vmem:[#allocation9 + $0x68] sm:$0xff] %v563_v9 }
 0x18c   :  { %v547_v44 = vpop.f32.mrf.mxu1 }
 0x18d   :  { %v548_v62 = vadd.f32 %v798_v45, %v547_v44 }
 0x18f   :  { %577 = vst [vmem:[#allocation9 + $0x38] sm:$0xff] %v548_v62 }
 0x190   :  { %v565_v11 = vpop.f32.mrf.mxu3 }
 0x191   :  { %v566_v12 = vadd.f32 %v798_v45, %v565_v11 }
 0x193   :  { %584 = vst [vmem:[#allocation9 + $0x70] sm:$0xff] %v566_v12 }
 0x198   :  { %v567_v13 = vpop.f32.mrf.mxu3 }
 0x199   :  { %v568_v14 = vadd.f32 %v798_v45, %v567_v13 }
 0x19b   :  { %585 = vst [vmem:[#allocation9 + $0x78] sm:$0xff] %v568_v14 }
 0x19c   :  { %589 = vsyncadd [#allocation5], 1792  ;;  %s592_s13 = sshll.u32 %s1088_s5, 4  ;;  %s940_s14 = smov [#allocation9]   ;;  %s593_s13 = int_to_ptr.hbm [resolvable:$true] %s592_s13 }
 0x19d   :  { %s590_s15 = sshll.u32 %s940_s14, 4  ;;  %s591_s15 = int_to_ptr.vmem [resolvable:$true] %s590_s15 }
 0x19e   :  { %598 = dma.vmem_to_hbm [thread:$0]  %s591_s15, 256, %s593_s13, [#allocation5], %s937_s30, %s937_s30, %s938_s6  }
 0x19f   :  { %931 = dma.done.wait [#allocation5], 2048  }
 0x1a0   :  { %932 = vsyncadd [#allocation5], 4294965248 }
 0x1a1   :  { %603 = vsyncpa [#allocation4], 1 }
 0x1a2   :  { %604 = vsyncpa [#allocation7], 1 }
 0x1a3   :  { %605 = vsyncpa [#allocation5], 1 }

</bundles_post_ra>
